<compile_context>
chip_gen: v5e
topology: v5e:2x2
jax: 0.10.0
libtpu: 0.0.40
codegen_flags: <defaults>
</compile_context>

<pallas_src>
import jax
import jax.numpy as jnp
from jax.experimental import pallas as pl
from jax.experimental.pallas import tpu as pltpu

IN_FEATURES = 72
HIDDEN = 64
HIDDEN_PAD = 128          # pad hidden width to one full 128-lane vreg
NUM_CLASSES = 2


def _round_up(n, m):
    return ((n + m - 1) // m) * m


# --------------------------------------------------------------------------- #
# Kernel
# --------------------------------------------------------------------------- #
def seizure_mlp_kernel(x_ref, w1_ref, b1_ref, dw_ref, db_ref, o_ref):
    # fc1: bf16 operands on the MXU, f32 accumulation; bias + ReLU on the VPU.
    h = jnp.dot(x_ref[...], w1_ref[...], preferred_element_type=jnp.float32)
    h = jnp.maximum(h + b1_ref[...], 0.0)                       # (TILE_B, 128) f32

    # fc3 + softmax(dim=1) over 2 classes == sigmoid of the logit difference.
    # d = h . (W3[:,1]-W3[:,0]) + (b3[1]-b3[0])  -> broadcast-mul + lane reduction.
    d = jnp.sum(h * dw_ref[...], axis=1, keepdims=True) + db_ref[...]   # (TILE_B, 1)
    p1 = 1.0 / (1.0 + jnp.exp(-d))                              # exp on EUP
    p0 = 1.0 - p1

    # Assemble (TILE_B, 2) probabilities without a lane concatenate.
    lane = jax.lax.broadcasted_iota(jnp.int32, o_ref.shape, 1)
    o_ref[...] = jnp.where(lane == 0, p0, p1).astype(o_ref.dtype)


# --------------------------------------------------------------------------- #
# Wrapper
# --------------------------------------------------------------------------- #
def seizure_mlp(x, w1, b1, dw, db, *, tile_b=2048, min_pallas_batch=0):
    """x: (B, ...) flattened to (B, 72). Returns (B, 2) softmax probabilities.

    w1: (72, 128) bf16, b1: (1, 128) f32, dw: (1, 128) f32, db: (1, 1) f32
    (produced by prepare_params()).
    """
    B = x.shape[0]
    x2d = x.reshape(B, -1)                                      # nn.Flatten()
    assert x2d.shape[1] == IN_FEATURES, f"expected {IN_FEATURES} features"
    hpad = w1.shape[1]

    if B < min_pallas_batch:
        # Tiny batches: custom-call/launch overhead dwarfs ~10 KFLOP/row of work;
        # let XLA's fused path handle it.
        xb = x2d.astype(jnp.bfloat16)
        h = jnp.maximum(
            jnp.dot(xb, w1, preferred_element_type=jnp.float32) + b1, 0.0)
        d = jnp.sum(h * dw, axis=1, keepdims=True) + db
        p1 = jax.nn.sigmoid(d)
        return jnp.concatenate([1.0 - p1, p1], axis=1)

    # Batch tile: multiple of 8 sublanes, capped at tile_b.
    tb = min(_round_up(tile_b, 8), _round_up(B, 8))
    B_pad = _round_up(B, tb)
    if B_pad != B:
        # Zero-padded rows stay finite through relu/sigmoid -> no NaNs anywhere.
        x2d = jnp.pad(x2d, ((0, B_pad - B), (0, 0)))
    x_bf = x2d.astype(jnp.bfloat16)                             # halve HBM stream bytes

    grid = (B_pad // tb,)
    bytes_accessed = (B_pad * IN_FEATURES * 2          # x (bf16)
                      + B_pad * NUM_CLASSES * 4        # out (f32)
                      + IN_FEATURES * hpad * 2         # w1 (bf16)
                      + 2 * hpad * 4 + 4)              # b1, dw, db

    out = pl.pallas_call(
        seizure_mlp_kernel,
        out_shape=jax.ShapeDtypeStruct((B_pad, NUM_CLASSES), jnp.float32),
        grid_spec=pltpu.PrefetchScalarGridSpec(
            num_scalar_prefetch=0,
            grid=grid,
            in_specs=[
                pl.BlockSpec((tb, IN_FEATURES), lambda i: (i, 0)),    # x: streamed tiles
                pl.BlockSpec((IN_FEATURES, hpad), lambda i: (0, 0)),  # w1: resident
                pl.BlockSpec((1, hpad), lambda i: (0, 0)),            # b1
                pl.BlockSpec((1, hpad), lambda i: (0, 0)),            # dw
                pl.BlockSpec((1, 1), lambda i: (0, 0)),               # db
            ],
            out_specs=pl.BlockSpec((tb, NUM_CLASSES), lambda i: (i, 0)),
        ),
        compiler_params=pltpu.CompilerParams(
            dimension_semantics=("parallel",),          # shard batch tiles across TCs
            vmem_limit_bytes=32 * 1024 * 1024,          # explicit; fits v5e/v6e/v7x
        ),
        cost_estimate=pl.CostEstimate(
            flops=2 * B_pad * hpad * (IN_FEATURES + 1),
            transcendentals=B_pad,
            bytes_accessed=bytes_accessed,
        ),
    )(x_bf, w1, b1, dw, db)
    return out[:B]


# --------------------------------------------------------------------------- #
# Parameters
# --------------------------------------------------------------------------- #
def init_torch_like_params(key):
    """PyTorch nn.Linear default init, PyTorch layout: W (out, in), b (out,)."""
    k1, k2, k3, k4 = jax.random.split(key, 4)
    bound1 = 1.0 / (IN_FEATURES ** 0.5)
    W1 = jax.random.uniform(k1, (HIDDEN, IN_FEATURES), jnp.float32, -bound1, bound1)
    B1 = jax.random.uniform(k2, (HIDDEN,), jnp.float32, -bound1, bound1)
    bound2 = 1.0 / (HIDDEN ** 0.5)
    W3 = jax.random.uniform(k3, (NUM_CLASSES, HIDDEN), jnp.float32, -bound2, bound2)
    B3 = jax.random.uniform(k4, (NUM_CLASSES,), jnp.float32, -bound2, bound2)
    return W1, B1, W3, B3


def prepare_params(W1, B1, W3, B3):
    """One-time conversion to kernel layout (done at init, not per call)."""
    # fc1: store transposed (in, out) and zero-pad hidden 64 -> 128.
    w1 = jnp.zeros((IN_FEATURES, HIDDEN_PAD), jnp.float32).at[:, :HIDDEN].set(W1.T)
    b1 = jnp.zeros((1, HIDDEN_PAD), jnp.float32).at[:, :HIDDEN].set(B1)
    # fc3 + 2-class softmax folded into sigmoid of the logit difference.
    dw = jnp.zeros((1, HIDDEN_PAD), jnp.float32).at[:, :HIDDEN].set(W3[1] - W3[0])
    db = (B3[1] - B3[0]).reshape(1, 1).astype(jnp.float32)
    return w1.astype(jnp.bfloat16), b1, dw, db


# --------------------------------------------------------------------------- #
# Demo / correctness check
# --------------------------------------------------------------------------- #
if __name__ == "__main__":
    key = jax.random.PRNGKey(0)
    k_in, k_par, k_in2 = jax.random.split(key, 3)

    W1, B1, W3, B3 = init_torch_like_params(k_par)
    w1, b1, dw, db = prepare_params(W1, B1, W3, B3)

    def ref(x):
        # Plain-JAX reference with the same bf16 input/weight rounding as the kernel.
        x2d = x.reshape(x.shape[0], -1)
        xb = x2d.astype(jnp.bfloat16).astype(jnp.float32)
        w1b = W1.astype(jnp.bfloat16).astype(jnp.float32)
        h = jnp.maximum(xb @ w1b.T + B1, 0.0)
        logits = h @ W3.T + B3
        return jax.nn.softmax(logits, axis=1)

    # Small case matching the module spec: (B=2, 4, 18) flattens to 72 features.
    x_small = jax.random.normal(k_in, (2, 4, 18), dtype=jnp.float32)
    out_small = jax.block_until_ready(seizure_mlp(x_small, w1, b1, dw, db))
    exp_small = jax.block_until_ready(ref(x_small))
    assert out_small.shape == (2, NUM_CLASSES)
    assert jnp.allclose(out_small, exp_small, atol=1e-3, rtol=1e-3)
    assert jnp.allclose(jnp.sum(out_small, axis=1), 1.0, atol=1e-5)

    # Ragged batch exercising the batch grid + zero-pad path (B not a tile multiple).
    x_big = jax.random.normal(k_in2, (50, IN_FEATURES), dtype=jnp.float32)
    out_big = jax.block_until_ready(seizure_mlp(x_big, w1, b1, dw, db, tile_b=16))
    exp_big = jax.block_until_ready(ref(x_big))
    assert out_big.shape == (50, NUM_CLASSES)
    assert jnp.allclose(out_big, exp_big, atol=1e-3, rtol=1e-3)
    assert jnp.allclose(jnp.sum(out_big, axis=1), 1.0, atol=1e-5)

    print("KERNEL_OK")
</pallas_src>

<mosaic_0001>
module attributes {stable_mosaic.version = 11 : i64} {
  func.func @seizure_mlp_kernel(%arg0: i32, %arg1: memref<8x72xbf16, #tpu.memory_space<vmem>>, %arg2: memref<72x128xbf16, #tpu.memory_space<vmem>>, %arg3: memref<1x128xf32, #tpu.memory_space<vmem>>, %arg4: memref<1x128xf32, #tpu.memory_space<vmem>>, %arg5: memref<1x1xf32, #tpu.memory_space<vmem>>, %arg6: memref<8x2xf32, #tpu.memory_space<vmem>>) attributes {dimension_semantics = [#tpu.dimension_semantics<parallel>], iteration_bounds = array<i64: 1>, scalar_prefetch = 0 : i64, scratch_operands = 0 : i64, tpu.core_type = #tpu.core_type<tc>, window_params = [{transform_indices = @transform_0, window_bounds = array<i64: 8, 72>}, {pipeline_mode = #tpu.pipeline_mode<synchronous>, transform_indices = @transform_1, window_bounds = array<i64: 72, 128>}, {pipeline_mode = #tpu.pipeline_mode<synchronous>, transform_indices = @transform_2, window_bounds = array<i64: 1, 128>}, {pipeline_mode = #tpu.pipeline_mode<synchronous>, transform_indices = @transform_3, window_bounds = array<i64: 1, 128>}, {pipeline_mode = #tpu.pipeline_mode<synchronous>, transform_indices = @transform_4, window_bounds = array<i64: 1, 1>}, {transform_indices = @transform_5, window_bounds = array<i64: 8, 2>}]} {
    %c0 = arith.constant 0 : index
    %c0_0 = arith.constant 0 : index
    %0 = vector.load %arg1[%c0, %c0_0] : memref<8x72xbf16, #tpu.memory_space<vmem>>, vector<8x72xbf16>
    %c0_1 = arith.constant 0 : index
    %c0_2 = arith.constant 0 : index
    %1 = vector.load %arg2[%c0_1, %c0_2] : memref<72x128xbf16, #tpu.memory_space<vmem>>, vector<72x128xbf16>
    %cst = arith.constant dense<0.000000e+00> : vector<8x128xf32>
    %2 = tpu.matmul %0, %1, %cst {dimension_numbers = #tpu.dot_dimension_numbers<[1], [0], [0], [1], [0, 0, 1, 1], [], []>} : vector<8x72xbf16>, vector<72x128xbf16>, vector<8x128xf32> -> vector<8x128xf32>
    %c0_3 = arith.constant 0 : index
    %c0_4 = arith.constant 0 : index
    %3 = vector.load %arg3[%c0_3, %c0_4] : memref<1x128xf32, #tpu.memory_space<vmem>>, vector<1x128xf32>
    %4 = vector.broadcast %3 : vector<1x128xf32> to vector<8x128xf32>
    %5 = arith.addf %2, %4 : vector<8x128xf32>
    %cst_5 = arith.constant 0.000000e+00 : f32
    %6 = vector.broadcast %cst_5 : f32 to vector<8x128xf32>
    %7 = arith.maximumf %5, %6 : vector<8x128xf32>
    %c0_6 = arith.constant 0 : index
    %c0_7 = arith.constant 0 : index
    %8 = vector.load %arg4[%c0_6, %c0_7] : memref<1x128xf32, #tpu.memory_space<vmem>>, vector<1x128xf32>
    %9 = vector.broadcast %8 : vector<1x128xf32> to vector<8x128xf32>
    %10 = arith.mulf %7, %9 : vector<8x128xf32>
    %cst_8 = arith.constant dense<0.000000e+00> : vector<8xf32>
    %11 = vector.multi_reduction <add>, %10, %cst_8 [1] : vector<8x128xf32> to vector<8xf32>
    %12 = vector.shape_cast %11 : vector<8xf32> to vector<8x1xf32>
    %c0_9 = arith.constant 0 : index
    %c0_10 = arith.constant 0 : index
    %13 = vector.load %arg5[%c0_9, %c0_10] : memref<1x1xf32, #tpu.memory_space<vmem>>, vector<1x1xf32>
    %14 = vector.broadcast %13 : vector<1x1xf32> to vector<8x1xf32>
    %15 = arith.addf %12, %14 : vector<8x1xf32>
    %cst_11 = arith.constant 0.000000e+00 : f32
    %16 = vector.broadcast %cst_11 : f32 to vector<8x1xf32>
    %17 = arith.subf %16, %15 : vector<8x1xf32>
    %18 = math.exp %17 : vector<8x1xf32>
    %cst_12 = arith.constant 1.000000e+00 : f32
    %19 = vector.broadcast %cst_12 : f32 to vector<8x1xf32>
    %20 = arith.addf %19, %18 : vector<8x1xf32>
    %cst_13 = arith.constant 1.000000e+00 : f32
    %21 = vector.broadcast %cst_13 : f32 to vector<8x1xf32>
    %22 = arith.divf %21, %20 : vector<8x1xf32>
    %cst_14 = arith.constant 1.000000e+00 : f32
    %23 = vector.broadcast %cst_14 : f32 to vector<8x1xf32>
    %24 = arith.subf %23, %22 : vector<8x1xf32>
    %25 = tpu.iota {dimensions = array<i32: 1>} : vector<8x2xi32>
    %c0_i32 = arith.constant 0 : i32
    %26 = vector.broadcast %c0_i32 : i32 to vector<8x2xi32>
    %27 = arith.cmpi eq, %25, %26 : vector<8x2xi32>
    %28 = vector.shape_cast %24 : vector<8x1xf32> to vector<8x1xf32>
    %29 = vector.broadcast %28 : vector<8x1xf32> to vector<8x2xf32>
    %30 = vector.shape_cast %22 : vector<8x1xf32> to vector<8x1xf32>
    %31 = vector.broadcast %30 : vector<8x1xf32> to vector<8x2xf32>
    %32 = arith.select %27, %29, %31 : vector<8x2xi1>, vector<8x2xf32>
    %c0_15 = arith.constant 0 : index
    %c0_16 = arith.constant 0 : index
    %33 = vector.load %arg6[%c0_15, %c0_16] : memref<8x2xf32, #tpu.memory_space<vmem>>, vector<8x2xf32>
    tpu.vector_store %arg6[%c0_15, %c0_16], %32 {strides = array<i32>} : memref<8x2xf32, #tpu.memory_space<vmem>>, vector<8x2xf32>,
    return
  }
  func.func @transform_0(%arg0: i32) -> (i32, i32) {
    %c0_i32 = arith.constant 0 : i32
    %c0_i32_0 = arith.constant 0 : i32
    return %arg0, %c0_i32 : i32, i32
  }
  func.func @transform_1(%arg0: i32) -> (i32, i32) {
    %c0_i32 = arith.constant 0 : i32
    %c0_i32_0 = arith.constant 0 : i32
    %c0_i32_1 = arith.constant 0 : i32
    return %c0_i32, %c0_i32_0 : i32, i32
  }
  func.func @transform_2(%arg0: i32) -> (i32, i32) {
    %c0_i32 = arith.constant 0 : i32
    %c0_i32_0 = arith.constant 0 : i32
    %c0_i32_1 = arith.constant 0 : i32
    return %c0_i32, %c0_i32_0 : i32, i32
  }
  func.func @transform_3(%arg0: i32) -> (i32, i32) {
    %c0_i32 = arith.constant 0 : i32
    %c0_i32_0 = arith.constant 0 : i32
    %c0_i32_1 = arith.constant 0 : i32
    return %c0_i32, %c0_i32_0 : i32, i32
  }
  func.func @transform_4(%arg0: i32) -> (i32, i32) {
    %c0_i32 = arith.constant 0 : i32
    %c0_i32_0 = arith.constant 0 : i32
    %c0_i32_1 = arith.constant 0 : i32
    return %c0_i32, %c0_i32_0 : i32, i32
  }
  func.func @transform_5(%arg0: i32) -> (i32, i32) {
    %c0_i32 = arith.constant 0 : i32
    %c0_i32_0 = arith.constant 0 : i32
    return %arg0, %c0_i32 : i32, i32
  }
}

</mosaic_0001>

<bundles_post_ra>
// kernel: tpu_custom_call.1
= control target key start
LH: loop header
LB: loop body
LE: loop exit
PB: predicated region body
PF: predicated region fallthrough
CT: control target
= control target key end

     0   :  { %s310_s0 = inlined_call_operand.hbm [shape: bf16[8,72], index: 0, kind: input, shape index: {}]   ;;  %s311_s1 = inlined_call_operand.hbm [shape: bf16[72,128], index: 1, kind: input, shape index: {}]   ;;  %s312_s2 = inlined_call_operand.vmem [shape: f32[1,128], index: 2, kind: input, shape index: {}]   ;;  %s313_s3 = inlined_call_operand.vmem [shape: f32[1,128], index: 3, kind: input, shape index: {}]   ;;  %s314_s4 = inlined_call_operand.<no memory space> [shape: f32[1,1], index: 4, kind: input, shape index: {}]   ;;  %s315_s5 = inlined_call_operand.vmem [shape: f32[8,2], index: 5, kind: output, shape index: {}]  }
   0x1   :  { %v10_v0 = vstv %s314_s4 }
   0x2   :  { %11 = vst [vmem:[#allocation2] sm:$0x1] %v10_v0 }
   0x3   :  { %12 = vsyncpa [#allocation4], 0  ;;  %s19_s22 = sshll.u32 %s310_s0, 4  ;;  %s20_s22 = int_to_ptr.hbm [resolvable:$true] %s19_s22 }
   0x4   :  { %13 = vsyncpa [#allocation6], 0  ;;  %s257_s23 = smov [#allocation3]   ;;  %s29_s27 = sshll.u32 %s311_s1, 4  ;;  %s30_s27 = int_to_ptr.hbm [resolvable:$true] %s29_s27 }
   0x5   :  { %s21_s24 = sshll.u32 %s257_s23, 4  ;;  %s258_s28 = smov [#allocation5]   ;;  %s22_s24 = int_to_ptr.vmem [resolvable:$true] %s21_s24 }
   0x6   :  { %24 = dma.hbm_to_vmem [thread:$0]  %s20_s22, 64, %s22_s24, [#allocation4]  }
   0x7   :  { %s31_s29 = sshll.u32 %s258_s28, 4  ;;  %s259_s4 = smov 64   ;;  %s32_s29 = int_to_ptr.vmem [resolvable:$true] %s31_s29 }
   0x8   :  { %s260_s30 = smov 4  }
   0x9   :  { %37 = dma.hbm_to_vmem [thread:$0]  %s30_s27, 576, %s32_s29, [#allocation6], %s259_s4, %s259_s4, %s260_s30  }
   0xa   :  { %253 = dma.done.wait [#allocation4], 64  }
   0xb   :  { %254 = vsyncadd [#allocation4], 4294967232 }
   0xc   :  { %255 = dma.done.wait [#allocation6], 576  }
   0xd   :  { %256 = vsyncadd [#allocation6], 4294966720  ;;  %v62_v1 = vld [vmem:[#allocation5 + $0x20] sm:$0xf]  ;;  %vm98_vm0 = vcmask 1043456   ;;  %v190_v5 = vld [vmem:[#allocation5 + $0x18] sm:$0xff]  ;;  %v148_v36 = vlaneseq }
   0xe   :  { %v84_v2 = vunpack.c.l.b16 %v62_v1  ;;  %v189_v6 = vld [vmem:[#allocation5 + $0x10] sm:$0xff]  ;;  %v188_v7 = vld [vmem:[#allocation5 + $0x8] sm:$0xff]  ;;  %v187_v8 = vld [vmem:[#allocation5] sm:$0xff]  ;;  %vm94_vm1 = vcmask 588800   ;;  %v261_v17 = vmov 0   ;;  %vm162_vm7 = vcmask 15360  }
   0xf   :  { %v53_v9 = vld [vmem:[#allocation3] sm:$0xf]  ;;  %v198_v10 = vld [vmem:[%s312_s2] ss:$0 sm:$0xff]  ;;  %197 = vset.pattern.permute.xlu1 %v261_v17  ;;  %196 = vset.pattern.permute.xlu0 %v261_v17  ;;  %v149_v37 = vand.u32 127, %v148_v36 }
  0x10   :  { %v89_v3 = vpack.c.b16 %v84_v2, %v84_v2  ;;  %v199_v13 = vld [vmem:[%s313_s3] ss:$0 sm:$0xff] }
  0x11   :  { %v200_v18 = vld [vmem:[#allocation2] ss:$0 sm:$0xff]  ;;  %vm150_vm6 = vcmp.eq.s32.totalorder %v149_v37, 0 }
  0x12   :  { %v100_v4 = vsel %vm98_vm0, %v89_v3, 0 }
  0x13   :  { %105 = vmatpush.bf16.msra.mxu0 %v100_v4 }
  0x17   :  { %106 = vmatpush.bf16.msra.mxu0 %v190_v5 }
  0x1b   :  { %107 = vmatpush.bf16.msra.mxu0 %v189_v6 }
  0x1f   :  { %108 = vmatpush.bf16.msra.mxu0 %v188_v7 }
  0x23   :  { %109 = vmatpush.bf16.msra.mxu0 %v187_v8 }
  0x26   :  { %186 = vmatmul.msk.bf16.vlgmr.msra.gmra.mxu0 %vm94_vm1, %v53_v9 }
  0xa3   :  { %v111_v11 = vpop.f32.mrf.mxu0 }
  0xa4   :  { %v112_v12 = vadd.f32 %v198_v10, %v111_v11 }
  0xa6   :  { %v115_v14 = vmax.f32 %v112_v12, 0.0 }
  0xa8   :  { %v120_v15 = vmul.f32 %v199_v13, %v115_v14 }
  0xaa   :  { %121 = vadd.xlane.f32.xlu0 %v120_v15 }
  0xab   :  { %v113_v16 = vpop.f32.mrf.mxu0 }
 0x11d   :  { %v122_v19 = vpop.xlane.xlu0 %121 }
 0x11e   :  { %v127_v20 = vadd.f32 %v200_v18, %v122_v19 }
 0x120   :  { %v128_v21 = vsub.f32 0.0, %v127_v20 }
 0x122   :  { %v129_v22 = vmul.f32 1.442695, %v128_v21 }
 0x124   :  { %201 = vpow2.f32 %v129_v22 }
 0x12a   :  { %v202_v23 = vpop.eup %201 }
 0x12b   :  { %v131_v24 = vadd.f32 1.0, %v202_v23 }
 0x12d   :  { %203 = vrcp.f32 %v131_v24  ;;  %v143_v28 = vand.u32 2147483648, %v131_v24  ;;  %v141_v30 = vand.u32 2147483647, %v131_v24  ;;  %vm137_vm3 = vweird.f32 %v131_v24 }
 0x12f   :  { %v144_v32 = vor.u32 1.1754944e-38, %v143_v28  ;;  %vm142_vm5 = vcmp.eq.f32.partialorder %v141_v30, 8.507059e+37 }
 0x133   :  { %v204_v25 = vpop.eup %203 }
 0x134   :  { %v133_v26 = vmul.f32 %v204_v25, %v131_v24  ;;  %vm138_vm2 = vweird.f32 %v204_v25 }
 0x135   :  { %vm139_vm4 = vmor %vm137_vm3, %vm138_vm2 }
 0x136   :  { %v134_v27 = vsub.f32 1.0, %v133_v26 }
 0x138   :  { %v135_v29 = vmul.f32 %v204_v25, %v134_v27 }
 0x13a   :  { %v136_v31 = vadd.f32 %v204_v25, %v135_v29 }
 0x13c   :  { %v140_v33 = vsel %vm139_vm4, %v204_v25, %v136_v31 }
 0x13d   :  { %v145_v34 = vsel %vm142_vm5, %v144_v32, %v140_v33 }
 0x13e   :  { %158 = vperm.xlu1 %197, %v145_v34   ;;  %v147_v35 = vsub.f32 1.0, %v145_v34 }
 0x140   :  { %153 = vperm.xlu0 %196, %v147_v35  }
 0x1b0   :  { %v159_v38 = vpop.permute.xlu1 %158 }
 0x1b2   :  { %v154_v39 = vpop.permute.xlu0 %153 }
 0x1b3   :  { %v161_v40 = vsel %vm150_vm6, %v154_v39, %v159_v38 }
 0x1b4   :  { %163 = vst.msk [vmem:[%s315_s5] sm:$0xff] %vm162_vm7, %v161_v40 }
 0x1b5   :  { %168 = vsyncpa [#allocation4], 1 }
 0x1b6   :  { %169 = vsyncpa [#allocation6], 1 }

</bundles_post_ra>
